<compile_context>
chip_gen: v6e
topology: v6e:2x2x1
jax: 0.10.0
libtpu: 0.0.40
codegen_flags: <defaults>
</compile_context>

<pallas_src>
import functools

import jax
import jax.numpy as jnp
from jax.experimental import pallas as pl
from jax.experimental.pallas import tpu as pltpu


_LANE = 128
_SUBLANE = 8


def _round_up(n, m):
    return ((n + m - 1) // m) * m


def _largest_divisor_leq(n, target):
    for cand in range(max(1, min(target, n)), 0, -1):
        if n % cand == 0:
            return cand
    return 1


def _pick_aligned_divisor(n, target, align):
    """Largest divisor of n <= target that is a multiple of align or == n (else None)."""
    for cand in range(min(target, n), 0, -1):
        if n % cand == 0 and (cand == n or cand % align == 0):
            return cand
    return None


def _vmem_limit_bytes():
    """Generation-aware scoped-VMEM budget (48 MiB on v7x, 64 MiB on v5e/v6e)."""
    cap = 128 * 1024 * 1024
    try:
        info = pltpu.get_tpu_info()
        cap = int(getattr(info, "vmem_capacity_bytes", cap)) or cap
    except Exception:
        pass
    return int(max(32 * 1024 * 1024, min(64 * 1024 * 1024, (cap * 3) // 4)))


def _head_kernel(x_ref, w1_ref, b1_ref, w2_ref, b2_ref, act_ref, logit_ref, acc_ref):
    s = pl.program_id(1)

    @pl.when(s == 0)
    def _init():
        acc_ref[...] = jnp.zeros_like(acc_ref)

    # x tile: (tb, ts, r, Dk).  axis=1 is NOT one of the two minor dims, so this
    # reduction lowers to pure elementwise vreg adds (VALU); the cross-sublane
    # (XLU) reduce over the r axis is deferred to the finalize step.  Always
    # accumulate in f32 so x may be fed in bf16.
    acc_ref[...] += jnp.sum(x_ref[...], axis=1, dtype=jnp.float32)

    @pl.when(s == pl.num_programs(1) - 1)
    def _finalize():
        # Single r-way sublane reduce, once per batch tile.
        pooled = jnp.sum(acc_ref[...], axis=1)              # (tb, Dk) f32
        # Lane-fold + 1/S mean scale are baked into w1 (rows tiled k times),
        # so pooled stays lane-dense going into the MXU.
        pooled = pooled.astype(w1_ref.dtype)

        # act = pre_layer(mean(out))
        act = jnp.dot(pooled, w1_ref[...], preferred_element_type=jnp.float32) \
            + b1_ref[...]
        act_ref[...] = act

        # logits = sigmoid(classifier(relu(act)))
        relu = jnp.maximum(act, 0.0).astype(w2_ref.dtype)
        logits = jnp.dot(relu, w2_ref[...], preferred_element_type=jnp.float32) \
            + b2_ref[...]
        # exp(-x) may overflow to +inf for very negative logits; 1/(1+inf)=0 is
        # still the correct sigmoid value.
        logit_ref[...] = 1.0 / (1.0 + jnp.exp(-logits))


@functools.partial(jax.jit, static_argnames=("batch_tile", "seq_tile", "param_dtype"))
def classifier_head(x, w1, b1, w2, b2, *, batch_tile=None, seq_tile=None,
                    param_dtype=jnp.float32):
    """x: (B, S, D); w1: (D, D) = W1^T; b1: (D,); w2: (D, C) = W2^T; b2: (C,).

    Returns (activations (B, D) f32, sigmoid logits flattened to (B*C,) f32).
    """
    B, S, D = x.shape
    C = w2.shape[1]
    Dp = _round_up(D, _LANE)
    Cp = _round_up(C, _LANE)
    f32 = jnp.float32

    # ---- Lane-fold: pack k sequence positions into the lane dim when D < 128.
    k = _largest_divisor_leq(S, max(1, _LANE // D)) if D < _LANE else 1
    Dk = k * D
    Sk = S // k
    # ---- Expose an explicit sublane axis of height r so the hot loop does
    #      only elementwise adds; the r-way reduce happens once in finalize.
    r = _largest_divisor_leq(Sk, _SUBLANE)
    Sg = Sk // r
    x4 = x.reshape(B, Sg, r, Dk)                              # contiguous -> free

    # ---- Parameters: fold-replicated (k copies of w1 rows), 1/S mean folded in,
    #      zero-padded to lane width so outputs/stores are lane-dense.
    w1f = jnp.zeros((Dk, Dp), f32).at[:, :D].set(jnp.tile(w1.astype(f32) / S, (k, 1)))
    b1p = jnp.zeros((1, Dp), f32).at[:, :D].set(b1.astype(f32).reshape(1, D))
    w2p = jnp.zeros((Dp, Cp), f32).at[:D, :C].set(w2.astype(f32))
    b2p = jnp.zeros((1, Cp), f32).at[:, :C].set(b2.astype(f32).reshape(1, C))
    w1f = w1f.astype(param_dtype)       # optional bf16 resident weights
    w2p = w2p.astype(param_dtype)

    # ---- Tile selection (generation aware).
    vmem_limit = _vmem_limit_bytes()
    itemsize = jnp.dtype(x.dtype).itemsize

    tb = batch_tile
    if tb is None:
        # Cap at B//2 so the "parallel" axis has >= 2 steps (v7x megacore);
        # raise toward 128 for MXU M-fill when B is large.
        target_tb = max(_SUBLANE, min(128, B // 2 if B >= 2 * _SUBLANE else B))
        tb = _pick_aligned_divisor(B, target_tb, _SUBLANE)
    if tb is None or tb < 1 or B % tb != 0 or not (tb == B or tb % _SUBLANE == 0):
        tb = _SUBLANE                                          # pad-to-multiple fallback
    Bp = _round_up(B, tb)
    if Bp != B:
        x4 = jnp.pad(x4, ((0, Bp - B), (0, 0), (0, 0), (0, 0)))

    # x streaming tile: ~4-8 MiB per buffer (double-buffered), within the budget.
    x_budget = min(8 * 1024 * 1024, vmem_limit // 5)
    if seq_tile is None:
        target_ts = max(1, x_budget // max(1, tb * r * Dk * itemsize))
    else:
        target_ts = max(1, seq_tile)
    ts = _largest_divisor_leq(Sg, target_ts)

    grid = (Bp // tb, Sg // ts)

    cost = pl.CostEstimate(
        flops=int(B * S * D + 2 * B * Dk * Dp + 2 * B * Dp * Cp),
        transcendentals=int(B * Cp),
        bytes_accessed=int(
            Bp * Sg * r * Dk * itemsize
            + (Dk * Dp + Dp * Cp) * jnp.dtype(param_dtype).itemsize
            + (Dp + Cp) * 4
            + Bp * (Dp + Cp) * 4
        ),
    )

    act_pad, logit_pad = pl.pallas_call(
        _head_kernel,
        out_shape=(
            jax.ShapeDtypeStruct((Bp, Dp), jnp.float32),
            jax.ShapeDtypeStruct((Bp, Cp), jnp.float32),
        ),
        grid_spec=pltpu.PrefetchScalarGridSpec(
            num_scalar_prefetch=0,
            grid=grid,
            in_specs=[
                # Streamed, pipelined x tiles (minor dims (r, Dk) are full dims).
                pl.BlockSpec((tb, ts, r, Dk), lambda b, s: (b, s, 0, 0)),
                # Parameters: constant block index -> resident in VMEM.
                pl.BlockSpec((Dk, Dp), lambda b, s: (0, 0)),
                pl.BlockSpec((1, Dp), lambda b, s: (0, 0)),
                pl.BlockSpec((Dp, Cp), lambda b, s: (0, 0)),
                pl.BlockSpec((1, Cp), lambda b, s: (0, 0)),
            ],
            out_specs=(
                # Lane-dense outputs; constant across the S (reduction) axis.
                pl.BlockSpec((tb, Dp), lambda b, s: (b, 0)),
                pl.BlockSpec((tb, Cp), lambda b, s: (b, 0)),
            ),
            scratch_shapes=[pltpu.VMEM((tb, r, Dk), jnp.float32)],
        ),
        compiler_params=pltpu.CompilerParams(
            dimension_semantics=("parallel", "arbitrary"),
            vmem_limit_bytes=vmem_limit,
        ),
        cost_estimate=cost,
    )(x4, w1f, b1p, w2p, b2p)

    act = act_pad[:B, :D]
    logits = logit_pad[:B, :C].reshape(-1)        # logits.view(-1)
    return act, logits


def init_params(key, out_dim, num_classes):
    """Deterministic synthetic parameters (nn.Linear layout, pre-transposed)."""
    k1, k2, k3, k4 = jax.random.split(key, 4)
    w1_t = jax.random.normal(k1, (out_dim, out_dim), jnp.float32) * 0.1       # W1^T
    b1 = jax.random.normal(k2, (out_dim,), jnp.float32) * 0.1
    w2_t = jax.random.normal(k3, (out_dim, num_classes), jnp.float32) * 0.1   # W2^T
    b2 = jax.random.normal(k4, (num_classes,), jnp.float32) * 0.1
    return w1_t, b1, w2_t, b2


if __name__ == "__main__":
    key = jax.random.PRNGKey(0)

    def reference(x, w1, b1, w2, b2):
        pooled = x.astype(jnp.float32).mean(axis=1)
        act = pooled @ w1 + b1
        logits = jax.nn.sigmoid(jnp.maximum(act, 0.0) @ w2 + b2).reshape(-1)
        return act, logits

    # --- Test 1: module-default shapes (out_dim=8, num_classes=1, 32 encoder blocks).
    B, S, D, C = 16, 32, 8, 1
    kx, kp = jax.random.split(key)
    x = jax.random.normal(kx, (B, S, D), jnp.float32)   # stands in for discriminator(inputs)[0]
    w1, b1, w2, b2 = init_params(kp, D, C)

    act, logits = classifier_head(x, w1, b1, w2, b2)
    jax.block_until_ready((act, logits))
    act_r, log_r = reference(x, w1, b1, w2, b2)
    assert act.shape == (B, D) and logits.shape == (B * C,)
    assert jnp.allclose(act, act_r, atol=1e-5), "activations mismatch (f32)"
    assert jnp.allclose(logits, log_r, atol=1e-5), "logits mismatch (f32)"

    # --- Test 2: multi-step sequence accumulation + batch-padding fallback.
    B2, S2, D2, C2 = 12, 512, 8, 3
    kx2, kp2 = jax.random.split(kp)
    x2 = jax.random.normal(kx2, (B2, S2, D2), jnp.float32)
    p2 = init_params(kp2, D2, C2)
    act2, logits2 = classifier_head(x2, *p2, batch_tile=8, seq_tile=1)
    jax.block_until_ready((act2, logits2))
    act2_r, log2_r = reference(x2, *p2)
    assert jnp.allclose(act2, act2_r, atol=1e-5), "activations mismatch (test 2)"
    assert jnp.allclose(logits2, log2_r, atol=1e-5), "logits mismatch (test 2)"

    # --- Test 3: bf16 x + bf16 resident weights (halved HBM/VMEM traffic; f32 accum).
    act3, logits3 = classifier_head(
        x.astype(jnp.bfloat16), w1, b1, w2, b2, param_dtype=jnp.bfloat16)
    jax.block_until_ready((act3, logits3))
    assert jnp.allclose(act3, act_r, atol=3e-2), "activations mismatch (bf16)"
    assert jnp.allclose(logits3, log_r, atol=3e-2), "logits mismatch (bf16)"

    print("KERNEL_OK")
</pallas_src>

<mosaic_0001>
module attributes {stable_mosaic.version = 11 : i64} {
  func.func @_head_kernel(%arg0: i32, %arg1: i32, %arg2: memref<8x1x2x128xf32, #tpu.memory_space<vmem>>, %arg3: memref<128x128xf32, #tpu.memory_space<vmem>>, %arg4: memref<1x128xf32, #tpu.memory_space<vmem>>, %arg5: memref<128x128xf32, #tpu.memory_space<vmem>>, %arg6: memref<1x128xf32, #tpu.memory_space<vmem>>, %arg7: memref<8x128xf32, #tpu.memory_space<vmem>>, %arg8: memref<8x128xf32, #tpu.memory_space<vmem>>, %arg9: memref<8x2x128xf32, #tpu.memory_space<vmem>>) attributes {dimension_semantics = [#tpu.dimension_semantics<parallel>, #tpu.dimension_semantics<arbitrary>], iteration_bounds = array<i64: 2, 1>, scalar_prefetch = 0 : i64, scratch_operands = 1 : i64, tpu.core_type = #tpu.core_type<tc>, window_params = [{transform_indices = @transform_0, window_bounds = array<i64: 8, 1, 2, 128>}, {pipeline_mode = #tpu.pipeline_mode<synchronous>, transform_indices = @transform_1, window_bounds = array<i64: 128, 128>}, {pipeline_mode = #tpu.pipeline_mode<synchronous>, transform_indices = @transform_2, window_bounds = array<i64: 1, 128>}, {pipeline_mode = #tpu.pipeline_mode<synchronous>, transform_indices = @transform_3, window_bounds = array<i64: 128, 128>}, {pipeline_mode = #tpu.pipeline_mode<synchronous>, transform_indices = @transform_4, window_bounds = array<i64: 1, 128>}, {transform_indices = @transform_5, window_bounds = array<i64: 8, 128>}, {transform_indices = @transform_6, window_bounds = array<i64: 8, 128>}]} {
    %c0_i32 = arith.constant 0 : i32
    %0 = arith.cmpi eq, %arg1, %c0_i32 : i32
    %1 = arith.extui %0 : i1 to i32
    %c0_i32_0 = arith.constant 0 : i32
    %2 = arith.cmpi ne, %1, %c0_i32_0 : i32
    scf.if %2 {
      %cst_12 = arith.constant 0.000000e+00 : f32
      %11 = vector.broadcast %cst_12 : f32 to vector<8x2x128xf32>
      %c0_13 = arith.constant 0 : index
      %c0_14 = arith.constant 0 : index
      %c0_15 = arith.constant 0 : index
      %12 = vector.load %arg9[%c0_13, %c0_14, %c0_15] : memref<8x2x128xf32, #tpu.memory_space<vmem>>, vector<8x2x128xf32>
      tpu.vector_store %arg9[%c0_13, %c0_14, %c0_15], %11 {strides = array<i32>} : memref<8x2x128xf32, #tpu.memory_space<vmem>>, vector<8x2x128xf32>,
    } else {
    }
    %c0 = arith.constant 0 : index
    %c0_1 = arith.constant 0 : index
    %c0_2 = arith.constant 0 : index
    %3 = vector.load %arg9[%c0, %c0_1, %c0_2] : memref<8x2x128xf32, #tpu.memory_space<vmem>>, vector<8x2x128xf32>
    %c0_3 = arith.constant 0 : index
    %c0_4 = arith.constant 0 : index
    %c0_5 = arith.constant 0 : index
    %c0_6 = arith.constant 0 : index
    %4 = vector.load %arg2[%c0_3, %c0_4, %c0_5, %c0_6] : memref<8x1x2x128xf32, #tpu.memory_space<vmem>>, vector<8x1x2x128xf32>
    %cst = arith.constant dense<0.000000e+00> : vector<8x2x128xf32>
    %5 = vector.multi_reduction <add>, %4, %cst [1] : vector<8x1x2x128xf32> to vector<8x2x128xf32>
    %6 = arith.addf %3, %5 : vector<8x2x128xf32>
    %c0_7 = arith.constant 0 : index
    %c0_8 = arith.constant 0 : index
    %c0_9 = arith.constant 0 : index
    %7 = vector.load %arg9[%c0_7, %c0_8, %c0_9] : memref<8x2x128xf32, #tpu.memory_space<vmem>>, vector<8x2x128xf32>
    tpu.vector_store %arg9[%c0_7, %c0_8, %c0_9], %6 {strides = array<i32>} : memref<8x2x128xf32, #tpu.memory_space<vmem>>, vector<8x2x128xf32>,
    %c0_i32_10 = arith.constant 0 : i32
    %8 = arith.cmpi eq, %arg1, %c0_i32_10 : i32
    %9 = arith.extui %8 : i1 to i32
    %c0_i32_11 = arith.constant 0 : i32
    %10 = arith.cmpi ne, %9, %c0_i32_11 : i32
    scf.if %10 {
      %c0_12 = arith.constant 0 : index
      %c0_13 = arith.constant 0 : index
      %c0_14 = arith.constant 0 : index
      %11 = vector.load %arg9[%c0_12, %c0_13, %c0_14] : memref<8x2x128xf32, #tpu.memory_space<vmem>>, vector<8x2x128xf32>
      %cst_15 = arith.constant dense<0.000000e+00> : vector<8x128xf32>
      %12 = vector.multi_reduction <add>, %11, %cst_15 [1] : vector<8x2x128xf32> to vector<8x128xf32>
      %c0_16 = arith.constant 0 : index
      %c0_17 = arith.constant 0 : index
      %13 = vector.load %arg3[%c0_16, %c0_17] : memref<128x128xf32, #tpu.memory_space<vmem>>, vector<128x128xf32>
      %cst_18 = arith.constant dense<0.000000e+00> : vector<8x128xf32>
      %14 = tpu.matmul %12, %13, %cst_18 {dimension_numbers = #tpu.dot_dimension_numbers<[1], [0], [0], [1], [0, 0, 1, 1], [], []>} : vector<8x128xf32>, vector<128x128xf32>, vector<8x128xf32> -> vector<8x128xf32>
      %c0_19 = arith.constant 0 : index
      %c0_20 = arith.constant 0 : index
      %15 = vector.load %arg4[%c0_19, %c0_20] : memref<1x128xf32, #tpu.memory_space<vmem>>, vector<1x128xf32>
      %16 = vector.broadcast %15 : vector<1x128xf32> to vector<8x128xf32>
      %17 = arith.addf %14, %16 : vector<8x128xf32>
      %c0_21 = arith.constant 0 : index
      %c0_22 = arith.constant 0 : index
      %18 = vector.load %arg7[%c0_21, %c0_22] : memref<8x128xf32, #tpu.memory_space<vmem>>, vector<8x128xf32>
      tpu.vector_store %arg7[%c0_21, %c0_22], %17 {strides = array<i32>} : memref<8x128xf32, #tpu.memory_space<vmem>>, vector<8x128xf32>,
      %cst_23 = arith.constant 0.000000e+00 : f32
      %19 = vector.broadcast %cst_23 : f32 to vector<8x128xf32>
      %20 = arith.maximumf %17, %19 : vector<8x128xf32>
      %c0_24 = arith.constant 0 : index
      %c0_25 = arith.constant 0 : index
      %21 = vector.load %arg5[%c0_24, %c0_25] : memref<128x128xf32, #tpu.memory_space<vmem>>, vector<128x128xf32>
      %cst_26 = arith.constant dense<0.000000e+00> : vector<8x128xf32>
      %22 = tpu.matmul %20, %21, %cst_26 {dimension_numbers = #tpu.dot_dimension_numbers<[1], [0], [0], [1], [0, 0, 1, 1], [], []>} : vector<8x128xf32>, vector<128x128xf32>, vector<8x128xf32> -> vector<8x128xf32>
      %c0_27 = arith.constant 0 : index
      %c0_28 = arith.constant 0 : index
      %23 = vector.load %arg6[%c0_27, %c0_28] : memref<1x128xf32, #tpu.memory_space<vmem>>, vector<1x128xf32>
      %24 = vector.broadcast %23 : vector<1x128xf32> to vector<8x128xf32>
      %25 = arith.addf %22, %24 : vector<8x128xf32>
      %cst_29 = arith.constant 0.000000e+00 : f32
      %26 = vector.broadcast %cst_29 : f32 to vector<8x128xf32>
      %27 = arith.subf %26, %25 : vector<8x128xf32>
      %28 = math.exp %27 : vector<8x128xf32>
      %cst_30 = arith.constant 1.000000e+00 : f32
      %29 = vector.broadcast %cst_30 : f32 to vector<8x128xf32>
      %30 = arith.addf %29, %28 : vector<8x128xf32>
      %cst_31 = arith.constant 1.000000e+00 : f32
      %31 = vector.broadcast %cst_31 : f32 to vector<8x128xf32>
      %32 = arith.divf %31, %30 : vector<8x128xf32>
      %c0_32 = arith.constant 0 : index
      %c0_33 = arith.constant 0 : index
      %33 = vector.load %arg8[%c0_32, %c0_33] : memref<8x128xf32, #tpu.memory_space<vmem>>, vector<8x128xf32>
      tpu.vector_store %arg8[%c0_32, %c0_33], %32 {strides = array<i32>} : memref<8x128xf32, #tpu.memory_space<vmem>>, vector<8x128xf32>,
    } else {
    }
    return
  }
  func.func @transform_0(%arg0: i32, %arg1: i32) -> (i32, i32, i32, i32) {
    %c0_i32 = arith.constant 0 : i32
    %c0_i32_0 = arith.constant 0 : i32
    %c0_i32_1 = arith.constant 0 : i32
    return %arg0, %arg1, %c0_i32, %c0_i32_0 : i32, i32, i32, i32
  }
  func.func @transform_1(%arg0: i32, %arg1: i32) -> (i32, i32) {
    %c0_i32 = arith.constant 0 : i32
    %c0_i32_0 = arith.constant 0 : i32
    %c0_i32_1 = arith.constant 0 : i32
    return %c0_i32, %c0_i32_0 : i32, i32
  }
  func.func @transform_2(%arg0: i32, %arg1: i32) -> (i32, i32) {
    %c0_i32 = arith.constant 0 : i32
    %c0_i32_0 = arith.constant 0 : i32
    %c0_i32_1 = arith.constant 0 : i32
    return %c0_i32, %c0_i32_0 : i32, i32
  }
  func.func @transform_3(%arg0: i32, %arg1: i32) -> (i32, i32) {
    %c0_i32 = arith.constant 0 : i32
    %c0_i32_0 = arith.constant 0 : i32
    %c0_i32_1 = arith.constant 0 : i32
    return %c0_i32, %c0_i32_0 : i32, i32
  }
  func.func @transform_4(%arg0: i32, %arg1: i32) -> (i32, i32) {
    %c0_i32 = arith.constant 0 : i32
    %c0_i32_0 = arith.constant 0 : i32
    %c0_i32_1 = arith.constant 0 : i32
    return %c0_i32, %c0_i32_0 : i32, i32
  }
  func.func @transform_5(%arg0: i32, %arg1: i32) -> (i32, i32) {
    %c0_i32 = arith.constant 0 : i32
    %c0_i32_0 = arith.constant 0 : i32
    return %arg0, %c0_i32 : i32, i32
  }
  func.func @transform_6(%arg0: i32, %arg1: i32) -> (i32, i32) {
    %c0_i32 = arith.constant 0 : i32
    %c0_i32_0 = arith.constant 0 : i32
    return %arg0, %c0_i32 : i32, i32
  }
}

</mosaic_0001>

<bundles_post_ra>
// kernel: classifier_head.1
= control target key start
LH: loop header
LB: loop body
LE: loop exit
PB: predicated region body
PF: predicated region fallthrough
CT: control target
= control target key end

     0   :  { %s927_s21 = smov 0   ;;  %s929_s22 = smov 0   ;;  %s1132_s0 = inlined_call_operand.vmem [shape: f32[16,1,2,128], index: 0, kind: input, shape index: {}]   ;;  %s1133_s1 = inlined_call_operand.vmem [shape: f32[128,128], index: 1, kind: input, shape index: {}]   ;;  %s1134_s2 = inlined_call_operand.vmem [shape: f32[1,128], index: 2, kind: input, shape index: {}]   ;;  %s1135_s3 = inlined_call_operand.vmem [shape: f32[128,128], index: 3, kind: input, shape index: {}]   ;;  %s1136_s4 = inlined_call_operand.vmem [shape: f32[1,128], index: 4, kind: input, shape index: {}]   ;;  %s1137_s5 = inlined_call_operand.vmem [shape: f32[16,128], index: 5, kind: output, shape index: {0}]   ;;  %s1138_s6 = inlined_call_operand.vmem [shape: f32[16,128], index: 6, kind: output, shape index: {1}]  }
   0x1   :  { %s931_s23 = smov 0  }
   0x2 LB: > { %s29_s24 = sadd.s32 1, %s884_s22  ;;  %p723_p0 = scmp.ge.s32.totalorder %s888_s23, 1  ;;  %s888_s23 = sphi %s931_s23, %s17_s23   ;;  %s884_s22 = sphi %s929_s22, %s1140_s22   ;;  %s880_s21 = sphi %s927_s21, %s1139_s21  }
   0x3   : > { %p31_p1 = scmp.ge.s32.totalorder %s29_s24, 2  ;;  %p233_p2 = scmp.lt.s32.totalorder %s888_s23, 3 }
   0x5   : > { %s1142_s24 = smov (%p31_p1, %s29_s24), 0  ;;  %p234_p3 = pnand %p723_p0, %p233_p2 }
   0x6   : > { %s724_s27 = sshll.u32 (!%p234_p3), %s880_s21, 3  ;;  %p278_p5 = scmp.lt.s32.totalorder (!%p234_p3), %s880_s21, 1 }
   0x7   : > { %237 = sbr.rel (%p234_p3) target bundleno = 480 (0x1e0), region = 40  ;;  %p270_p4 = scmp.lt.s32.totalorder (!%p234_p3), %s724_s27, 15 }
   0xc   : > { %v421_v0 = vld [vmem:[%s1133_s1 + $0x78] sm:$0xff]  ;;  %v890_v1 = vmov 0.0   ;;  %v420_v2 = vld [vmem:[%s1133_s1 + $0x70] sm:$0xff]  ;;  %vm891_vm0 = vmmov 0   ;;  %v419_v3 = vld [vmem:[%s1133_s1 + $0x68] sm:$0xff]  ;;  %s1144_s27 = smov (!%p270_p4, %s724_s27), 15 }
   0xd   : > { %766 = vmatprep.subr.mxu0 %v890_v1  ;;  %290 = vst [vmem:[#allocation2] sm:$0x3] %v890_v1  ;;  %291 = vst [vmem:[#allocation2 + $0x2] sm:$0x3] %v890_v1  ;;  %798 = vmatprep.mubr.msk.f32.mxu0 %vm891_vm0, %v890_v1  ;;  %v418_v4 = vld [vmem:[%s1133_s1 + $0x60] sm:$0xff]  ;;  %s725_s10 = sshll.u32 %s1144_s27, 1 }
   0xe   : > { %292 = vst [vmem:[#allocation2 + $0x4] sm:$0x3] %v890_v1  ;;  %293 = vst [vmem:[#allocation2 + $0x6] sm:$0x3] %v890_v1  ;;  %767 = vmatpush3.msra.mxu0 %v421_v0  ;;  %801 = vmatprep.subr.mxu1 %v890_v1  ;;  %v539_v5 = vld [vmem:[%s1135_s3 + $0x78] sm:$0xff]  ;;  %v538_v6 = vld [vmem:[%s1135_s3 + $0x70] sm:$0xff]  ;;  %s986_s19 = scalar_lea.vmem %s1132_s0, %s725_s10 }
   0xf   : > { %294 = vst [vmem:[#allocation2 + $0x8] sm:$0x3] %v890_v1  ;;  %295 = vst [vmem:[#allocation2 + $0xa] sm:$0x3] %v890_v1  ;;  %768 = vmatprep.subr.mxu0 %v890_v1  ;;  %833 = vmatprep.mubr.msk.f32.mxu1 %vm891_vm0, %v890_v1  ;;  %v417_v7 = vld [vmem:[%s1133_s1 + $0x58] sm:$0xff]  ;;  %v537_v8 = vld [vmem:[%s1135_s3 + $0x68] sm:$0xff] }
  0x10   : > { %296 = vst [vmem:[#allocation2 + $0xc] sm:$0x3] %v890_v1  ;;  %297 = vst [vmem:[#allocation2 + $0xe] sm:$0x3] %v890_v1  ;;  %769 = vmatpush3.msra.mxu0 %v420_v2  ;;  %802 = vmatpush3.msra.mxu1 %v539_v5  ;;  %v416_v9 = vld [vmem:[%s1133_s1 + $0x50] sm:$0xff]  ;;  %v536_v13 = vld [vmem:[%s1135_s3 + $0x60] sm:$0xff] }
  0x11   : > { %770 = vmatprep.subr.mxu0 %v890_v1  ;;  %v306_v10 = vld [vmem:[%s986_s19] sm:$0x3]  ;;  %v307_v11 = vld [vmem:[%s986_s19 + $0x2] sm:$0x3]  ;;  %v308_v12 = vld [vmem:[%s986_s19 + $0x4] sm:$0x3]  ;;  %803 = vmatprep.subr.mxu1 %v890_v1 }
  0x12   : > { %771 = vmatpush3.msra.mxu0 %v419_v3  ;;  %804 = vmatpush3.msra.mxu1 %v538_v6  ;;  %v415_v17 = vld [vmem:[%s1133_s1 + $0x48] sm:$0xff]  ;;  %v535_v24 = vld [vmem:[%s1135_s3 + $0x58] sm:$0xff]  ;;  %v309_v27 = vld [vmem:[%s986_s19 + $0x6] sm:$0x3]  ;;  %vm349_vm1 = vcmask 1041408   ;;  %vm437_vm2 = vcmask 1041409  }
  0x13   : > { %772 = vmatprep.subr.mxu0 %v890_v1  ;;  %805 = vmatprep.subr.mxu1 %v890_v1  ;;  %v310_v28 = vld [vmem:[%s986_s19 + $0x8] sm:$0x3]  ;;  %v311_v29 = vld [vmem:[%s986_s19 + $0xa] sm:$0x3]  ;;  %v312_v30 = vld [vmem:[%s986_s19 + $0xc] sm:$0x3] }
  0x14   : > { %773 = vmatpush3.msra.mxu0 %v418_v4  ;;  %v298_v14 = vld [vmem:[#allocation2] sm:$0x3]  ;;  %v299_v15 = vld [vmem:[#allocation2 + $0x2] sm:$0x3]  ;;  %806 = vmatpush3.msra.mxu1 %v537_v8  ;;  %v313_v32 = vld [vmem:[%s986_s19 + $0xe] sm:$0x3] }
  0x15   : > { %v300_v16 = vld [vmem:[#allocation2 + $0x4] sm:$0x3]  ;;  %774 = vmatprep.subr.mxu0 %v890_v1  ;;  %v301_v18 = vld [vmem:[#allocation2 + $0x6] sm:$0x3]  ;;  %v322_v21 = vadd.f32 %v306_v10, %v298_v14  ;;  %v323_v22 = vadd.f32 %v307_v11, %v299_v15  ;;  %807 = vmatprep.subr.mxu1 %v890_v1  ;;  %v534_v38 = vld [vmem:[%s1135_s3 + $0x50] sm:$0xff]  ;;  %vm439_vm3 = vcmask 1042434  }
  0x16   : > { %v302_v19 = vld [vmem:[#allocation2 + $0x8] sm:$0x3]  ;;  %v303_v20 = vld [vmem:[#allocation2 + $0xa] sm:$0x3]  ;;  %v324_v23 = vadd.f32 %v308_v12, %v300_v16  ;;  %775 = vmatpush3.msra.mxu0 %v417_v7  ;;  %v325_v31 = vadd.f32 %v309_v27, %v301_v18  ;;  %808 = vmatpush3.msra.mxu1 %v536_v13  ;;  %v414_v36 = vld [vmem:[%s1133_s1 + $0x40] sm:$0xff]  ;;  %vm441_vm4 = vcmask 1043459  }
  0x17   : > { %v304_v25 = vld [vmem:[#allocation2 + $0xc] sm:$0x3]  ;;  %v305_v26 = vld [vmem:[#allocation2 + $0xe] sm:$0x3]  ;;  %776 = vmatprep.subr.mxu0 %v890_v1  ;;  %330 = vst [vmem:[#allocation2] sm:$0x3] %v322_v21  ;;  %v326_v33 = vadd.f32 %v310_v28, %v302_v19  ;;  %v327_v34 = vadd.f32 %v311_v29, %v303_v20  ;;  %809 = vmatprep.subr.mxu1 %v890_v1 }
  0x18   : > { %331 = vst [vmem:[#allocation2 + $0x2] sm:$0x3] %v323_v22  ;;  %332 = vst [vmem:[#allocation2 + $0x4] sm:$0x3] %v324_v23  ;;  %777 = vmatpush3.msra.mxu0 %v416_v9  ;;  %v328_v35 = vadd.f32 %v312_v30, %v304_v25  ;;  %v329_v37 = vadd.f32 %v313_v32, %v305_v26  ;;  %810 = vmatpush3.msra.mxu1 %v535_v24  ;;  %v413_v39 = vld [vmem:[%s1133_s1 + $0x38] sm:$0xff]  ;;  %v533_v40 = vld [vmem:[%s1135_s3 + $0x48] sm:$0xff] }
  0x19   : > { %778 = vmatprep.subr.mxu0 %v890_v1  ;;  %333 = vst [vmem:[#allocation2 + $0x6] sm:$0x3] %v325_v31  ;;  %334 = vst [vmem:[#allocation2 + $0x8] sm:$0x3] %v326_v33  ;;  %811 = vmatprep.subr.mxu1 %v890_v1  ;;  %v412_v41 = vld [vmem:[%s1133_s1 + $0x30] sm:$0xff]  ;;  %v532_v42 = vld [vmem:[%s1135_s3 + $0x40] sm:$0xff] }
  0x1a   : > { %779 = vmatpush3.msra.mxu0 %v415_v17  ;;  %335 = vst [vmem:[#allocation2 + $0xa] sm:$0x3] %v327_v34  ;;  %336 = vst [vmem:[#allocation2 + $0xc] sm:$0x3] %v328_v35  ;;  %812 = vmatpush3.msra.mxu1 %v534_v38  ;;  %v411_v46 = vld [vmem:[%s1133_s1 + $0x28] sm:$0xff]  ;;  %v410_v47 = vld [vmem:[%s1133_s1 + $0x20] sm:$0xff] }
  0x1b   : > { %780 = vmatprep.subr.mxu0 %v890_v1  ;;  %337 = vst [vmem:[#allocation2 + $0xe] sm:$0x3] %v329_v37  ;;  %813 = vmatprep.subr.mxu1 %v890_v1  ;;  %v531_v51 = vld [vmem:[%s1135_s3 + $0x38] sm:$0xff]  ;;  %v530_v56 = vld [vmem:[%s1135_s3 + $0x30] sm:$0xff]  ;;  %v529_v11 = vld [vmem:[%s1135_s3 + $0x28] sm:$0xff]  ;;  %vm443_vm5 = vcmask 1044484  }
  0x1c   : > { %781 = vmatpush3.msra.mxu0 %v414_v36  ;;  %814 = vmatpush3.msra.mxu1 %v533_v40  ;;  %v409_v2 = vld [vmem:[%s1133_s1 + $0x18] sm:$0xff]  ;;  %v408_v12 = vld [vmem:[%s1133_s1 + $0x10] sm:$0xff]  ;;  %v528_v21 = vld [vmem:[%s1135_s3 + $0x20] sm:$0xff]  ;;  %vm445_vm6 = vcmask 1045509   ;;  %vm447_vm7 = vcmask 1046534   ;;  %vm449_vm8 = vcmask 1047559  }
  0x1d   : > { %782 = vmatprep.subr.mxu0 %v890_v1  ;;  %815 = vmatprep.subr.mxu1 %v890_v1  ;;  %v407_v22 = vld [vmem:[%s1133_s1 + $0x8] sm:$0xff]  ;;  %v406_v31 = vld [vmem:[%s1133_s1] sm:$0xff]  ;;  %v527_v36 = vld [vmem:[%s1135_s3 + $0x18] sm:$0xff]  ;;  %s1146_s21 = smov (!%p278_p5, %s880_s21), 1 }
  0x1e   : > { %783 = vmatpush3.msra.mxu0 %v413_v39  ;;  %v341_v43 = vld [vmem:[#allocation2] sm:$0x3]  ;;  %816 = vmatpush3.msra.mxu1 %v532_v42  ;;  %s726_s10 = sshll.u32 %s1146_s21, 3 }
  0x1f   : > { %v342_v44 = vld [vmem:[#allocation2 + $0x2] sm:$0x3]  ;;  %v343_v45 = vld [vmem:[#allocation2 + $0x4] sm:$0x3]  ;;  %784 = vmatprep.subr.mxu0 %v890_v1  ;;  %v350_v48 = vsel %vm349_vm1, %v341_v43, 0.0  ;;  %817 = vmatprep.subr.mxu1 %v890_v1  ;;  %s281_s15 = scalar_lea.vmem %s1137_s5, %s726_s10  ;;  %s285_s19 = scalar_lea.vmem %s1138_s6, %s726_s10 }
  0x20   : > { %v357_v49 = vsel %vm349_vm1, %v342_v44, 0.0  ;;  %v364_v50 = vsel %vm349_vm1, %v343_v45, 0.0  ;;  %785 = vmatpush3.msra.mxu0 %v412_v41  ;;  %v344_v52 = vld [vmem:[#allocation2 + $0x6] sm:$0x3]  ;;  %v351_v53 = vrot.slane %v350_v48, 4  ;;  %818 = vmatpush3.msra.mxu1 %v531_v51 }
  0x21   : > { %v358_v54 = vrot.slane %v357_v49, 4  ;;  %v365_v55 = vrot.slane %v364_v50, 4  ;;  %786 = vmatprep.subr.mxu0 %v890_v1  ;;  %v345_v57 = vld [vmem:[#allocation2 + $0x8] sm:$0x3]  ;;  %v346_v58 = vld [vmem:[#allocation2 + $0xa] sm:$0x3]  ;;  %819 = vmatprep.subr.mxu1 %v890_v1 }
  0x22   : > { %v347_v59 = vld [vmem:[#allocation2 + $0xc] sm:$0x3]  ;;  %787 = vmatpush3.msra.mxu0 %v411_v46  ;;  %v348_v60 = vld [vmem:[#allocation2 + $0xe] sm:$0x3]  ;;  %v352_v61 = vadd.f32 %v351_v53, %v350_v48  ;;  %v371_v0 = vsel %vm349_vm1, %v344_v52, 0.0  ;;  %v378_v4 = vsel %vm349_vm1, %v345_v57, 0.0  ;;  %820 = vmatpush3.msra.mxu1 %v530_v56 }
  0x23   : > { %v359_v62 = vadd.f32 %v358_v54, %v357_v49  ;;  %v366_v63 = vadd.f32 %v365_v55, %v364_v50  ;;  %788 = vmatprep.subr.mxu0 %v890_v1  ;;  %v372_v3 = vrot.slane %v371_v0, 4  ;;  %v385_v5 = vsel %vm349_vm1, %v346_v58, 0.0  ;;  %821 = vmatprep.subr.mxu1 %v890_v1 }
  0x24   : > { %v392_v6 = vsel %vm349_vm1, %v347_v59, 0.0  ;;  %789 = vmatpush3.msra.mxu0 %v410_v47  ;;  %v353_v7 = vrot.slane %v352_v61, 2  ;;  %v379_v10 = vrot.slane %v378_v4, 4  ;;  %v386_v14 = vrot.slane %v385_v5, 4  ;;  %822 = vmatpush3.msra.mxu1 %v529_v11 }
  0x25   : > { %v360_v8 = vrot.slane %v359_v62, 2  ;;  %v367_v9 = vrot.slane %v366_v63, 2  ;;  %790 = vmatprep.subr.mxu0 %v890_v1  ;;  %v373_v13 = vadd.f32 %v372_v3, %v371_v0  ;;  %v393_v15 = vrot.slane %v392_v6, 4  ;;  %823 = vmatprep.subr.mxu1 %v890_v1  ;;  %v524_v0 = vld [vmem:[%s1135_s3] sm:$0xff] }
  0x26   : > { %v399_v16 = vsel %vm349_vm1, %v348_v60, 0.0  ;;  %791 = vmatpush3.msra.mxu0 %v409_v2  ;;  %v354_v17 = vadd.f32 %v353_v7, %v352_v61  ;;  %v380_v20 = vadd.f32 %v379_v10, %v378_v4  ;;  %v387_v24 = vadd.f32 %v386_v14, %v385_v5  ;;  %824 = vmatpush3.msra.mxu1 %v528_v21  ;;  %v728_v2 = vld [vmem:[%s1134_s2] ss:$0 sm:$0xff] }
  0x27   : > { %v361_v18 = vadd.f32 %v360_v8, %v359_v62  ;;  %v368_v19 = vadd.f32 %v367_v9, %v366_v63  ;;  %792 = vmatprep.subr.mxu0 %v890_v1  ;;  %v374_v23 = vrot.slane %v373_v13, 2  ;;  %v394_v25 = vadd.f32 %v393_v15, %v392_v6  ;;  %825 = vmatprep.subr.mxu1 %v890_v1  ;;  %v526_v62 = vld [vmem:[%s1135_s3 + $0x10] sm:$0xff]  ;;  %v525_v63 = vld [vmem:[%s1135_s3 + $0x8] sm:$0xff]  ;;  %v729_v6 = vld [vmem:[%s1136_s4] ss:$0 sm:$0xff] }
  0x28   : > { %v400_v26 = vrot.slane %v399_v16, 4  ;;  %793 = vmatpush3.msra.mxu0 %v408_v12  ;;  %v355_v27 = vrot.slane %v354_v17, 1  ;;  %v381_v30 = vrot.slane %v380_v20, 2  ;;  %v388_v33 = vrot.slane %v387_v24, 2  ;;  %826 = vmatpush3.msra.mxu1 %v527_v36 }
  0x29   : > { %v362_v28 = vrot.slane %v361_v18, 1  ;;  %v369_v29 = vrot.slane %v368_v19, 1  ;;  %794 = vmatprep.subr.mxu0 %v890_v1  ;;  %v375_v32 = vadd.f32 %v374_v23, %v373_v13  ;;  %v395_v34 = vrot.slane %v394_v25, 2  ;;  %827 = vmatprep.subr.mxu1 %v890_v1 }
  0x2a   : > { %v401_v35 = vadd.f32 %v400_v26, %v399_v16  ;;  %795 = vmatpush3.msra.mxu0 %v407_v22  ;;  %v356_v37 = vadd.f32 %v355_v27, %v354_v17  ;;  %v382_v40 = vadd.f32 %v381_v30, %v380_v20  ;;  %v389_v42 = vadd.f32 %v388_v33, %v387_v24 }
  0x2b   : > { %v363_v38 = vadd.f32 %v362_v28, %v361_v18  ;;  %v370_v39 = vadd.f32 %v369_v29, %v368_v19  ;;  %796 = vmatprep.subr.mxu0 %v890_v1  ;;  %v376_v41 = vrot.slane %v375_v32, 1  ;;  %v396_v43 = vadd.f32 %v395_v34, %v394_v25  ;;  %828 = vmatpush3.msra.mxu1 %v526_v62 }
  0x2c   : > { %v402_v44 = vrot.slane %v401_v35, 2  ;;  %797 = vmatpush3.msra.mxu0 %v406_v31  ;;  %v383_v45 = vrot.slane %v382_v40, 1  ;;  %v390_v48 = vrot.slane %v389_v42, 1  ;;  %829 = vmatprep.subr.mxu1 %v890_v1 }
  0x2d   : > { %v438_v46 = vsel %vm437_vm2, %v363_v38, %v356_v37  ;;  %v377_v47 = vadd.f32 %v376_v41, %v375_v32  ;;  %v397_v49 = vrot.slane %v396_v43, 1  ;;  %830 = vmatpush3.msra.mxu1 %v525_v63 }
  0x2e   : > { %v403_v50 = vadd.f32 %v402_v44, %v401_v35  ;;  %v384_v51 = vadd.f32 %v383_v45, %v382_v40  ;;  %v440_v52 = vsel %vm439_vm3, %v370_v39, %v438_v46  ;;  %v391_v53 = vadd.f32 %v390_v48, %v389_v42  ;;  %831 = vmatprep.subr.mxu1 %v890_v1 }
  0x2f   : > { %v398_v54 = vadd.f32 %v397_v49, %v396_v43  ;;  %v442_v56 = vsel %vm441_vm4, %v377_v47, %v440_v52  ;;  %832 = vmatpush3.msra.mxu1 %v524_v0 }
  0x30   : > { %v404_v55 = vrot.slane %v403_v50, 1  ;;  %v444_v57 = vsel %vm443_vm5, %v384_v51, %v442_v56 }
  0x31   : > { %v446_v59 = vsel %vm445_vm6, %v391_v53, %v444_v57 }
  0x32   : > { %v405_v58 = vadd.f32 %v404_v55, %v403_v50  ;;  %v448_v60 = vsel %vm447_vm7, %v398_v54, %v446_v59 }
  0x34   : > { %v450_v61 = vsel %vm449_vm8, %v405_v58, %v448_v60 }
  0x35   : > { %799 = vmatmul.mubr.f32.vlgmr.msra.gmra.mxu0 %v450_v61 }
  0xf5   : > { %v518_v3 = vpop.f32.mrf.mxu0 }
  0xf6   : > { %v519_v4 = vadd.f32 %v728_v2, %v518_v3 }
  0xf7   : > { %v800_v5 = vpop.f32.mrf.mxu0 }
  0xf8   : > { %522 = vst [vmem:[%s281_s15] sm:$0xff] %v519_v4  ;;  %v523_v1 = vmax.f32 %v519_v4, 0.0 }
  0xfa   : > { %834 = vmatmul.mubr.f32.vlgmr.msra.gmra.mxu1 %v523_v1 }
 0x1ba   : > { %v613_v7 = vpop.f32.mrf.mxu1 }
 0x1bb   : > { %v614_v8 = vadd.f32 %v729_v6, %v613_v7 }
 0x1bc   : > { %v835_v9 = vpop.f32.mrf.mxu1 }
 0x1bd   : > { %v617_v10 = vsub.f32 0.0, %v614_v8 }
 0x1bf   : > { %v618_v11 = vmul.f32 1.442695, %v617_v10 }
 0x1c1   : > { %862 = vpow2.f32 %v618_v11 }
 0x1ce   : > { %v863_v12 = vpop.eup %862 }
 0x1cf   : > { %v620_v13 = vadd.f32 1.0, %v863_v12 }
 0x1d1   : > { %864 = vrcp.f32 %v620_v13 }
 0x1de   : > { %v865_v14 = vpop.eup %864 }
 0x1df   : > { %623 = vst [vmem:[%s285_s19] sm:$0xff] %v865_v14 }
 0x1e0 PF: > { %s17_s23 = sadd.s32 1, %s888_s23   ;;  %s1139_s21 = smov %s884_s22 }
 0x1e1   : > { %p14_p6 = scmp.ge.s32.totalorder %s17_s23, 4   ;;  %s1140_s22 = smov %s1142_s24 }
 0x1e3   :  { %16 = sbr.rel (!%p14_p6) target bundleno = 2 (0x2), region = 90 }

</bundles_post_ra>
